<compile_context>
chip_gen: v6e
topology: v6e:2x2x1
jax: 0.10.0
libtpu: 0.0.40
codegen_flags: <defaults>
</compile_context>

<pallas_src>
import numpy as np
import jax
import jax.numpy as jnp
from jax.experimental import pallas as pl
from jax.experimental.pallas import tpu as pltpu


def _gather_row_kernel(src_ref, x_ref, o_ref):
    # src_ref: (N,) int32 scalar-prefetch indices in SMEM (consumed by index_maps).
    # x_ref  : (1, 1, d_tile) tile of the *source* row (row src_ref[i]).
    # o_ref  : (1, 1, d_tile) tile of output row i.
    del src_ref
    o_ref[...] = x_ref[...]


def _source_indices(cell_type_indices, permutations):
    """src[i] such that out[i] = x[src[i]], matching the PyTorch module.

    Exact int32 arithmetic, O(N * num_types) work.  Assumes each type occurs at most
    max_indices times and permutations[t][:count_t] only contains values < count_t
    (the same implicit requirements as the PyTorch reference).
    """
    n = cell_type_indices.shape[0]
    num_types, max_indices = permutations.shape
    types = cell_type_indices.astype(jnp.int32)                                  # (N,)
    onehot_t = (types[:, None] ==
                jnp.arange(num_types, dtype=jnp.int32)[None, :]).astype(jnp.int32)
    # rank[i] = #{ j < i : types[j] == types[i] }  (exclusive cumulative count)
    rank = jnp.sum(onehot_t * (jnp.cumsum(onehot_t, axis=0) - onehot_t), axis=1)  # (N,)
    k = permutations.astype(jnp.int32)[types, rank]            # perm[type[i]][rank[i]]
    # pos_of[t, r] = position (input order) of the type-t node with rank r == pos_t[r]
    pos_of = jnp.zeros((num_types, max_indices), jnp.int32).at[types, rank].set(
        jnp.arange(n, dtype=jnp.int32))
    return pos_of[types, k]                                                      # (N,)


def permutation_layer(x, cell_type_indices, permutations):
    """x: (N, D) float32, cell_type_indices: (N,) int, permutations: (T, M) float."""
    n, d = x.shape
    src = _source_indices(cell_type_indices, permutations)      # (N,) int32

    # Feature tiling: largest lane-aligned tile that divides D, else the whole D.
    d_tile = d
    for cand in (512, 256, 128):
        if d % cand == 0:
            d_tile = cand
            break
    n_d = d // d_tile

    # Bitcast view so the block's last two dims equal the full array dims (layout rule).
    x3 = x.reshape(n, 1, d)

    grid_spec = pltpu.PrefetchScalarGridSpec(
        num_scalar_prefetch=1,
        grid=(n, n_d),
        in_specs=[
            # Data-dependent row gather: source row index comes from SMEM prefetch.
            pl.BlockSpec((1, 1, d_tile), lambda i, j, src_ref: (src_ref[i], 0, j)),
        ],
        out_specs=pl.BlockSpec((1, 1, d_tile), lambda i, j, src_ref: (i, 0, j)),
    )
    out = pl.pallas_call(
        _gather_row_kernel,
        out_shape=jax.ShapeDtypeStruct((n, 1, d), x.dtype),
        grid_spec=grid_spec,
        compiler_params=pltpu.CompilerParams(
            dimension_semantics=("parallel", "parallel")),
    )(src, x3)
    return out.reshape(n, d)


def reference_numpy(x, cell_type_indices, permutations, num_types):
    xn = np.asarray(x)
    tn = np.asarray(cell_type_indices)
    pn = np.asarray(permutations).astype(np.int64)
    out = xn.copy()
    for t in range(num_types):
        mask = tn == t
        cnt = int(mask.sum())
        if cnt:
            idx = pn[t][:cnt]
            out[mask] = xn[mask][idx]
    return out


if __name__ == "__main__":
    # Small, module-consistent shapes.
    num_types = 3
    max_indices = 8
    feat = 32
    N = num_types * max_indices  # every type appears exactly max_indices times

    key = jax.random.PRNGKey(0)
    kperm = jax.random.split(key, num_types)
    kx, ktypes = jax.random.split(jax.random.fold_in(key, 7))

    # Parameter init mirroring the module: random per-type permutations stored as float.
    permutations = jnp.stack(
        [jax.random.permutation(kperm[t], max_indices) for t in range(num_types)]
    ).astype(jnp.float32)                                        # (num_types, max_indices)

    # Inputs.
    x = jax.random.normal(kx, (N, feat), dtype=jnp.float32)      # (N, D)
    cell_type_indices = jax.random.permutation(
        ktypes, jnp.repeat(jnp.arange(num_types, dtype=jnp.int32), max_indices))  # (N,)

    out = permutation_layer(x, cell_type_indices, permutations)
    out = jax.block_until_ready(out)

    ref = reference_numpy(x, cell_type_indices, permutations, num_types)
    assert out.shape == (N, feat) and out.dtype == jnp.float32
    np.testing.assert_allclose(np.asarray(out), ref, rtol=0, atol=0)  # exact row copy

    print("KERNEL_OK")
</pallas_src>

<mosaic_0001>
module attributes {stable_mosaic.version = 11 : i64} {
  func.func @_gather_row_kernel(%arg0: i32, %arg1: i32, %arg2: memref<24xi32, #tpu.memory_space<smem>>, %arg3: memref<1x1x32xf32, #tpu.memory_space<vmem>>, %arg4: memref<1x1x32xf32, #tpu.memory_space<vmem>>) attributes {dimension_semantics = [#tpu.dimension_semantics<parallel>, #tpu.dimension_semantics<parallel>], iteration_bounds = array<i64: 24, 1>, scalar_prefetch = 1 : i64, scratch_operands = 0 : i64, tpu.core_type = #tpu.core_type<tc>, window_params = [{transform_indices = @transform_0, window_bounds = array<i64: 1, 1, 32>}, {transform_indices = @transform_1, window_bounds = array<i64: 1, 1, 32>}]} {
    %c0 = arith.constant 0 : index
    %c0_0 = arith.constant 0 : index
    %c0_1 = arith.constant 0 : index
    %0 = vector.load %arg3[%c0, %c0_0, %c0_1] : memref<1x1x32xf32, #tpu.memory_space<vmem>>, vector<1x1x32xf32>
    %c0_2 = arith.constant 0 : index
    %c0_3 = arith.constant 0 : index
    %c0_4 = arith.constant 0 : index
    %1 = vector.load %arg4[%c0_2, %c0_3, %c0_4] : memref<1x1x32xf32, #tpu.memory_space<vmem>>, vector<1x1x32xf32>
    tpu.vector_store %arg4[%c0_2, %c0_3, %c0_4], %0 {strides = array<i32>} : memref<1x1x32xf32, #tpu.memory_space<vmem>>, vector<1x1x32xf32>,
    return
  }
  func.func @transform_0(%arg0: i32, %arg1: i32, %arg2: memref<24xi32, #tpu.memory_space<smem>>) -> (i32, i32, i32) {
    %0 = arith.index_cast %arg0 : i32 to index
    %1 = memref.load %arg2[%0] : memref<24xi32, #tpu.memory_space<smem>>
    %c0_i32 = arith.constant 0 : i32
    %c0_i32_0 = arith.constant 0 : i32
    return %1, %c0_i32, %arg1 : i32, i32, i32
  }
  func.func @transform_1(%arg0: i32, %arg1: i32, %arg2: memref<24xi32, #tpu.memory_space<smem>>) -> (i32, i32, i32) {
    %c0_i32 = arith.constant 0 : i32
    %c0_i32_0 = arith.constant 0 : i32
    return %arg0, %c0_i32, %arg1 : i32, i32, i32
  }
}

</mosaic_0001>

<bundles_post_ra>
// kernel: tpu_custom_call.1
= control target key start
LH: loop header
LB: loop body
LE: loop exit
PB: predicated region body
PF: predicated region fallthrough
CT: control target
= control target key end

     0   :  { %s488_s9 = smov [#allocation3]   ;;  %s692_s0 = inlined_call_operand.hbm [shape: s32[24], index: 0, kind: input, shape index: {}]   ;;  %s693_s1 = inlined_call_operand.hbm [shape: f32[24,1,32], index: 1, kind: input, shape index: {}]   ;;  %s694_s2 = inlined_call_operand.hbm [shape: f32[24,1,32], index: 2, kind: output, shape index: {}]  }
   0x1   :  { %8 = dma.hbm_to_smem %s692_s0, 16, %s488_s9, [#allocation2] }
   0x2   :  { %442 = dma.done.wait [#allocation2], 16 }
   0x3   :  { %443 = vsyncadd [#allocation2], 4294967280 }
   0x4   :  { %10 = sfence }
   0x5   :  { %11 = vsyncpa [#allocation5], 0 }
   0x6   :  { %13 = vsyncpa [#allocation5 + $0x1], 0 }
   0x7   :  { %14 = vsyncpa [#allocation6], 0 }
   0x8   :  { %16 = vsyncpa [#allocation6 + $0x1], 0  ;;  %s509_s12 = smov 0   ;;  %s511_s13 = smov 0  }
   0x9   :  { %s513_s14 = smov 0   ;;  %s515_s15 = smov 0  }
   0xa   :  { %s517_s16 = smov 0   ;;  %s519_s17 = smov 0  }
   0xb   :  { %s521_s0 = smov 0   ;;  %s523_s18 = smov 0  }
   0xc   :  { %s525_s19 = smov 0  }
   0xd LB: > { %s244_s20 = sadd.s32 4294967295, %s486_s19   ;;  %s245_s21 = sadd.s32 4294967294, %s486_s19   ;;  %s486_s19 = sphi %s525_s19, %s22_s19   ;;  %s482_s18 = sphi %s523_s18, %s717_s18   ;;  %s478_s0 = sphi %s521_s0, %s716_s0   ;;  %s474_s17 = sphi %s519_s17, %s715_s17   ;;  %s470_s16 = sphi %s517_s16, %s714_s16   ;;  %s466_s15 = sphi %s515_s15, %s713_s15   ;;  %s462_s14 = sphi %s513_s14, %s712_s14   ;;  %s458_s13 = sphi %s511_s13, %s711_s13   ;;  %s454_s12 = sphi %s509_s12, %s710_s12  }
   0xe   : > { %s34_s22 = sadd.s32 1, %s482_s18  ;;  %s38_s23 = sld [smem:[#allocation3 + %s482_s18]] }
   0xf   : > { %p36_p0 = scmp.ge.s32.totalorder %s34_s22, 24  ;;  %s45_s24 = sadd.s32 1, %s474_s17 }
  0x10   : > { %p52_p1 = scmp.ne.s32.totalorder %s474_s17, %s470_s16  ;;  %p53_p2 = scmp.eq.s32.totalorder %s486_s19, 0 }
  0x11   : > { %s719_s22 = smov (%p36_p0, %s34_s22), 0  ;;  %p58_p4 = scmp.ne.s32.totalorder %s470_s16, %s466_s15 }
  0x12   : > { %698 = sst [smem:[#allocation13_spill]] %s719_s22  ;;  %p562_p3 = por %p53_p2, %p52_p1 }
  0x13   : > { %s39_s26 = sld [smem:[#allocation3 + %s719_s22]]  ;;  %p59_p5 = scmp.eq.s32.totalorder %s244_s20, 0 }
  0x14   : > { %s68_s27 = ssub.s32 %s482_s18, %s719_s22  ;;  %s73_s28 = sadd.s32 1, %s462_s14 }
  0x15   : > { %p571_p6 = por %p59_p5, %p58_p4  ;;  %p71_p7 = scmp.eq.s32.totalorder %s68_s27, 0 }
  0x16   : > { %p83_p8 = scmp.ne.s32.totalorder %s462_s14, %s458_s13  ;;  %p84_p9 = scmp.eq.s32.totalorder %s244_s20, 23 }
  0x17   : > { %s700_s29 = scalar_select %p571_p6, 1, 0 }
  0x18   : > { %s578_s30 = scalar_select %p71_p7, %s462_s14, %s73_s28  }
  0x19   : > { %p580_p10 = por %p84_p9, %p83_p8  ;;  %p89_p11 = scmp.ne.s32.totalorder %s458_s13, %s454_s12 }
  0x1a   : > { %s40_s4 = ssub.s32 %s38_s23, %s39_s26  ;;  %p90_p12 = scmp.eq.s32.totalorder %s245_s21, 23 }
  0x1b   : > { %s701_s3 = scalar_select %p580_p10, 1, 0 }
  0x1c   : > { %p43_p13 = scmp.eq.s32.totalorder %s40_s4, 0  ;;  %p586_p0 = por %p90_p12, %p89_p11 }
  0x1d   : > { %p269_p1 = scmp.lt.s32.totalorder %s486_s19, 24  ;;  %s110_s7 = sand.u32 1, %s474_s17  }
  0x1e   : > { %s702_s5 = scalar_select %p586_p0, 1, 0 }
  0x1f   : > { %s592_s6 = scalar_select %p43_p13, %s474_s17, %s45_s24  }
  0x20   : > { %p597_p2 = pnand %p269_p1, %p562_p3  ;;  %p249_p4 = scmp.ge.s32.totalorder %s486_s19, 1 }
  0x21   : > { %s253_s9 = scalar_select %p562_p3, [#allocation3], [#allocation8] }
  0x22   : > { %s254_s10 = scalar_select %p562_p3, %s482_s18, 0 }
  0x23   : > { %s721_s9 = smov (!%p269_p1, %s253_s9), [#allocation9]  ;;  %p127_p5 = scmp.lt.s32.totalorder %s486_s19, 25 }
  0x24   : > { %s723_s10 = smov (!%p269_p1, %s254_s10), 0  ;;  %s113_s15 = scalar_lea.vmem [#allocation4], %s110_s7 }
  0x25   : > { %s114_s11 = sld [smem:[%s721_s9 + %s723_s10]]  ;;  %s122_s20 = sshll.u32 %s113_s15, 4  ;;  %s612_s20 = int_to_ptr.vmem [resolvable:$true] %s122_s20 }
  0x26   : > { %p608_p7 = pnand %p249_p4, %p127_p5  ;;  %s111_s27 = scalar_lea.sflag [#allocation5], %s110_s7 }
  0x27   : > { %p354_p8 = pneg %p597_p2  ;;  %s357_s10 = scalar_lea.hbm %s693_s1, 384 }
  0x28   : > { %s704_s21 = scalar_select %p608_p7, 1, 0 }
  0x2b   : > { %s248_s23 = sshll.u32 %s114_s11, 4 }
  0x2c   : > { %s120_s25 = scalar_lea.hbm %s693_s1, %s248_s23 }
  0x2d   : > { %s352_s28 = scalar_lea.hbm %s120_s25, 16  ;;  %p358_p12 = scmp.lt.s32.totalorder %s120_s25, %s693_s1 }
  0x2e   : > { %p353_p3 = scmp.ne.s32.totalorder %s120_s25, %s352_s28  ;;  %p359_p13 = scmp.lt.s32.totalorder %s357_s10, %s352_s28 }
  0x30   : > { %p355_p9 = pnand %p354_p8, %p353_p3  ;;  %p360_p1 = por %p359_p13, %p358_p12 }
  0x32   : > { %p356_p11 = pneg %p355_p9 }
  0x34   : > { %p361_p4 = pnand %p360_p1, %p356_p11 }
  0x36   : > { %364 = shalt.err (!%p361_p4)
}
  0x37   : > { %s365_s7 = scalar_lea.vmem %s612_s20, 16  ;;  %s489_s11 = smov [#allocation4]  }
  0x38   : > { %p366_p5 = scmp.ne.s32.totalorder %s612_s20, %s365_s7  ;;  %s370_s23 = sshll.u32 %s489_s11, 4  ;;  %s371_s23 = int_to_ptr.vmem [resolvable:$false] %s370_s23 }
  0x39   : > { %s372_s24 = scalar_lea.vmem %s371_s23, 32  ;;  %p373_p9 = scmp.lt.s32.totalorder %s612_s20, %s371_s23 }
  0x3a   : > { %p368_p0 = pnand %p366_p5, %p354_p8  ;;  %p374_p10 = scmp.lt.s32.totalorder %s372_s24, %s365_s7 }
  0x3c   : > { %p369_p3 = pneg %p368_p0  ;;  %p375_p6 = por %p374_p10, %p373_p9 }
  0x3e   : > { %p376_p7 = pnand %p375_p6, %p369_p3 }
  0x40   : > { %379 = shalt.err (!%p376_p7)
}
  0x41   : > { %264 = dma.hbm_to_vmem [thread:$0]  (!%p597_p2), %s120_s25, 16, %s612_s20, %s111_s27  }
  0x42   : > { %p705_p11 = scmp.ne.s32.totalorder %s704_s21, 0 }
  0x43   : > { %s133_s22 = sand.u32 (!%p705_p11), 1, %s470_s16   ;;  %p706_p0 = scmp.ne.s32.totalorder (!%p705_p11), %s700_s29, 0 }
  0x44   : > { %131 = sbr.rel (%p705_p11) target bundleno = 99 (0x63), region = 24  ;;  %s134_s26 = scalar_lea.sflag (!%p705_p11), [#allocation5], %s133_s22 }
  0x45   : > { %s136_s28 = scalar_lea.vmem (!%p705_p11), [#allocation4], %s133_s22 }
  0x49   : > { %445 = dma.done.wait (%p706_p0), %s134_s26, 16  }
  0x4a   : > { %447 = vsyncadd (%p706_p0), %s134_s26, 4294967280  ;;  %s151_s4 = sand.u32 1, %s458_s13   ;;  %s250_s20 = sshll.u32 %s478_s0, 4  ;;  %vm155_vm0 = vcmask 253952   ;;  %v154_v0 = vld [vmem:[%s136_s28] sm:$0x1] }
  0x4b   : > { %s152_s8 = scalar_lea.vmem [#allocation7], %s151_s4  ;;  %s169_s27 = scalar_lea.hbm %s694_s2, %s250_s20 }
  0x4c   : > { %s171_s9 = sshll.u32 %s152_s8, 4  ;;  %156 = vst.msk [vmem:[%s152_s8] sm:$0x1] %vm155_vm0, %v154_v0  ;;  %s158_s29 = scalar_lea.sflag [#allocation6], %s151_s4  ;;  %s640_s9 = int_to_ptr.vmem [resolvable:$true] %s171_s9 }
  0x4d   : > { %s380_s10 = scalar_lea.vmem %s640_s9, 16  ;;  %p707_p10 = scmp.ne.s32.totalorder %s701_s3, 0 }
  0x4e   : > { %p381_p6 = scmp.ne.s32.totalorder %s640_s9, %s380_s10  ;;  %s490_s15 = smov [#allocation7]  }
  0x4f   : > { %s384_s0 = sshll.u32 %s490_s15, 4  ;;  %s385_s0 = int_to_ptr.vmem [resolvable:$false] %s384_s0 }
  0x50   : > { %p382_p2 = pnand %p381_p6, %p707_p10  ;;  %s386_s7 = scalar_lea.vmem %s385_s0, 32 }
  0x51   : > { %p387_p8 = scmp.lt.s32.totalorder %s640_s9, %s385_s0  ;;  %p388_p12 = scmp.lt.s32.totalorder %s386_s7, %s380_s10 }
  0x52   : > { %p383_p7 = pneg %p382_p2 }
  0x53   : > { %p389_p13 = por %p388_p12, %p387_p8 }
  0x55   : > { %p390_p1 = pnand %p389_p13, %p383_p7 }
  0x57   : > { %393 = shalt.err (!%p390_p1)
}
  0x58   : > { %s394_s11 = scalar_lea.hbm %s169_s27, 16  ;;  %s398_s22 = scalar_lea.hbm %s694_s2, 384 }
  0x59   : > { %p395_p4 = scmp.ne.s32.totalorder %s169_s27, %s394_s11  ;;  %p399_p9 = scmp.lt.s32.totalorder %s169_s27, %s694_s2 }
  0x5a   : > { %p400_p11 = scmp.lt.s32.totalorder %s398_s22, %s394_s11 }
  0x5b   : > { %p396_p5 = pnand %p395_p4, %p707_p10 }
  0x5c   : > { %p401_p0 = por %p400_p11, %p399_p9 }
  0x5d   : > { %p397_p3 = pneg %p396_p5 }
  0x5f   : > { %p402_p6 = pnand %p401_p0, %p397_p3 }
  0x61   : > { %405 = shalt.err (!%p402_p6)
}
  0x62   : > { %257 = dma.vmem_to_hbm [thread:$0]  (%p707_p10), %s640_s9, 16, %s169_s27, %s158_s29  }
  0x63 PF: > { %p270_p2 = scmp.ge.s32.totalorder %s486_s19, 2  ;;  %s183_s4 = sand.u32 1, %s454_s12  }
  0x64   : > { %p708_p7 = scmp.ne.s32.totalorder %s702_s5, 0  ;;  %s184_s8 = scalar_lea.sflag [#allocation6], %s183_s4 }
  0x66   : > { %p266_p8 = pnand %p270_p2, %p708_p7 }
  0x68   : > { %p267_p12 = pneg %p266_p8 }
  0x6a   : > { %449 = dma.done.wait (%p267_p12), %s184_s8, 16  }
  0x6b   : > { %451 = vsyncadd (%p267_p12), %s184_s8, 4294967280  ;;  %s22_s19 = sadd.s32 1, %s486_s19   ;;  %s709_s3 = sld [smem:[#allocation13_spill]] }
  0x6c   : > { %p19_p13 = scmp.ge.s32.totalorder %s22_s19, 26   ;;  %s710_s12 = smov %s458_s13 }
  0x6d   : > { %s711_s13 = smov %s462_s14  ;;  %s712_s14 = smov %s578_s30 }
  0x6e   : > { %s713_s15 = smov %s470_s16  ;;  %s714_s16 = smov %s474_s17 }
  0x6f   : > { %s715_s17 = smov %s592_s6  ;;  %s716_s0 = smov %s482_s18 }
  0x70   :  { %21 = sbr.rel (!%p19_p13) target bundleno = 13 (0xd), region = 69 }
  0x71   : > { %s717_s18 = smov %s709_s3 }
  0x75   :  { %188 = vsyncpa [#allocation5], 1 }
  0x76   :  { %190 = vsyncpa [#allocation5 + $0x1], 1 }
  0x77   :  { %191 = vsyncpa [#allocation6], 1 }
  0x78   :  { %193 = vsyncpa [#allocation6 + $0x1], 1 }

</bundles_post_ra>
